<compile_context>
chip_gen: v7x
topology: tpu7x:2x2x1
jax: 0.10.0
libtpu: 0.0.40
codegen_flags: <defaults>
</compile_context>

<pallas_src>
import numpy as np
import jax
import jax.numpy as jnp
from jax.experimental import pallas as pl
from jax.experimental.pallas import tpu as pltpu


# ----------------------------------------------------------------------------
# Hyperparameters (mirrors compute_resolution_nlevel + Namespace args)
# ----------------------------------------------------------------------------
BOUNDING_BOX = np.array([[-1.0, -1.0, -1.0],
                         [ 1.0,  1.0,  1.0]], dtype=np.float32)
SPATIAL_SCALING = 1.0
COARSEST_RES = 0.5          # args.coarsest_resolution_deform
FINEST_RES = 0.125          # args.finest_resolution_deform
LEVEL_SCALE = 2.0           # args.level_scale_deform
N_FEATURES_PER_LEVEL = 2    # args.n_features_per_level_deform
LOG2_HASHMAP_SIZE = 10      # args.log2_hashmap_size
N_FEATURES_DEFORM = 8       # args.n_features_deform (feature dim of `e`)
WIDTH = 32                  # args.width
N_HIDDEN_LAYERS = 2


def compute_resolution_nlevel(bb, coarsest, finest, level_scale, spatial_scaling):
    ext = (bb[1] - bb[0]).max() * spatial_scaling
    base_resolution = int(np.ceil(ext / coarsest))
    n_levels = int(np.ceil(np.log2(ext / finest / base_resolution)
                           / np.log2(level_scale) + 1))
    return base_resolution, n_levels


BASE_RES, N_LEVELS = compute_resolution_nlevel(
    BOUNDING_BOX, COARSEST_RES, FINEST_RES, LEVEL_SCALE, SPATIAL_SCALING)
HASHMAP_SIZE = 2 ** LOG2_HASHMAP_SIZE
D_PE = N_LEVELS * N_FEATURES_PER_LEVEL           # hash-grid feature dims
D_IN = D_PE + N_FEATURES_DEFORM                  # MLP input dims


def _round_up(n, m):
    return ((n + m - 1) // m) * m


# ----------------------------------------------------------------------------
# Hash-grid encoding (Smoothstep interpolation) -- plain JAX glue.
# Feature-major: takes (3, N), returns (D_PE, N).
# ----------------------------------------------------------------------------
_PRIMES = np.array([1, 2654435761, 805459861], dtype=np.uint32)
_RES = (float(BASE_RES) * (LEVEL_SCALE ** np.arange(N_LEVELS))).astype(np.float32)
_CORNERS = np.array([[(c >> d) & 1 for d in range(3)] for c in range(8)],
                    dtype=np.uint32)             # (8, 3)


def hash_encode_t(x_norm_t, table_flat):
    """Vectorized over levels.

    x_norm_t: (3, N) in [0, 1].  table_flat: (N_LEVELS*HASHMAP_SIZE, F).
    Returns (N_LEVELS * F, N).
    """
    n = x_norm_t.shape[1]
    res = jnp.asarray(_RES)[:, None, None]                       # (L,1,1)
    scaled = x_norm_t[None, :, :] * res                          # (L,3,N)
    pos0 = jnp.floor(scaled)
    frac = scaled - pos0
    # Smoothstep interpolation weights
    w = frac * frac * (3.0 - 2.0 * frac)                         # (L,3,N)
    pos0u = pos0.astype(jnp.uint32)
    primes = jnp.asarray(_PRIMES)[None, :, None]                 # (1,3,1)
    lvl_base = (jnp.arange(N_LEVELS, dtype=jnp.uint32)
                * jnp.uint32(HASHMAP_SIZE))[:, None]             # (L,1)

    acc = jnp.zeros((N_LEVELS, n, N_FEATURES_PER_LEVEL), jnp.float32)
    for corner in range(8):
        off = _CORNERS[corner]                                   # (3,) uint32 in {0,1}
        p = pos0u + jnp.asarray(off)[None, :, None]              # (L,3,N)
        hp = p * primes                                          # wraps in uint32
        h = (hp[:, 0] ^ hp[:, 1] ^ hp[:, 2]) % jnp.uint32(HASHMAP_SIZE)   # (L,N)
        idx = (h + lvl_base).astype(jnp.int32)                   # (L,N) flat index
        sel = jnp.asarray(off.astype(np.float32))[None, :, None] # (1,3,1)
        cw = jnp.prod(jnp.where(sel == 1.0, w, 1.0 - w), axis=1) # (L,N)
        acc = acc + cw[..., None] * jnp.take(table_flat, idx, axis=0)     # (L,N,F)

    return jnp.transpose(acc, (0, 2, 1)).reshape(N_LEVELS * N_FEATURES_PER_LEVEL, n)


def hash_encode_ref(x_norm_t, tables):
    """Per-level loop reference (independent of the vectorized path)."""
    n = x_norm_t.shape[1]
    feats = []
    for lvl in range(N_LEVELS):
        res = float(BASE_RES) * (LEVEL_SCALE ** lvl)
        scaled = x_norm_t * res
        pos0 = jnp.floor(scaled)
        frac = scaled - pos0
        w = frac * frac * (3.0 - 2.0 * frac)                     # (3, N)
        pos0u = pos0.astype(jnp.uint32)
        table_t = tables[lvl].T                                  # (F, HASHMAP_SIZE)
        acc = jnp.zeros((N_FEATURES_PER_LEVEL, n), jnp.float32)
        for corner in range(8):
            off = np.array([(corner >> d) & 1 for d in range(3)], dtype=np.uint32)
            p = pos0u + jnp.asarray(off)[:, None]
            hp = p * jnp.asarray(_PRIMES)[:, None]
            h = (hp[0] ^ hp[1] ^ hp[2]) % jnp.uint32(HASHMAP_SIZE)
            cw = jnp.prod(jnp.where(jnp.asarray(off)[:, None] == 1, w, 1.0 - w),
                          axis=0, keepdims=True)                 # (1, N)
            acc = acc + cw * jnp.take(table_t, h.astype(jnp.int32), axis=1)
        feats.append(acc)
    return jnp.concatenate(feats, axis=0)


# ----------------------------------------------------------------------------
# Pallas kernel: 3-layer Tanh MLP + residual (bbox de-norm folded into layer 3)
# All blocks are feature-major (C, tm): points on the lane axis.
# ----------------------------------------------------------------------------
def deform_mlp_kernel(pe_ref, e_ref, x_ref,
                      w1p_ref, w1e_ref, b1_ref,
                      w2_ref, b2_ref, w3_ref, b3_ref, out_ref):
    # Layer 1: split input matmul (pe and e arrive as separate lane-dense blocks)
    h = jnp.dot(w1p_ref[...], pe_ref[...], preferred_element_type=jnp.float32)
    h = h + jnp.dot(w1e_ref[...], e_ref[...], preferred_element_type=jnp.float32)
    h = jnp.tanh(h + b1_ref[...])
    # Layer 2
    h = jnp.tanh(jnp.dot(w2_ref[...], h, preferred_element_type=jnp.float32)
                 + b2_ref[...])
    # Layer 3 (weights pre-scaled by bbox extent) + residual with raw coords.
    o = jnp.dot(w3_ref[...], h, preferred_element_type=jnp.float32) + b3_ref[...]
    out_ref[...] = o + x_ref[...]


def deform_mlp(pe_t, e_t, x_t, folded_params, *, tm):
    """pe_t: (D_PE, Np), e_t: (D_E, Np), x_t: (3, Np); Np % tm == 0."""
    Np = pe_t.shape[1]
    assert Np % tm == 0
    w1p, w1e, b1, w2, b2, w3, b3 = folded_params
    full = lambda shape: pl.BlockSpec(shape, lambda i: (0, 0))
    return pl.pallas_call(
        deform_mlp_kernel,
        out_shape=jax.ShapeDtypeStruct((3, Np), jnp.float32),
        grid_spec=pltpu.PrefetchScalarGridSpec(
            num_scalar_prefetch=0,
            grid=(Np // tm,),
            in_specs=[
                pl.BlockSpec((D_PE, tm), lambda i: (0, i)),             # pe^T
                pl.BlockSpec((N_FEATURES_DEFORM, tm), lambda i: (0, i)),# e^T
                pl.BlockSpec((3, tm), lambda i: (0, i)),                # x^T (raw)
                full((WIDTH, D_PE)), full((WIDTH, N_FEATURES_DEFORM)),  # layer 1
                full((WIDTH, 1)),
                full((WIDTH, WIDTH)), full((WIDTH, 1)),                 # layer 2
                full((3, WIDTH)), full((3, 1)),                         # layer 3 (scaled)
            ],
            out_specs=pl.BlockSpec((3, tm), lambda i: (0, i)),
        ),
        compiler_params=pltpu.CompilerParams(
            dimension_semantics=("parallel",)),
    )(pe_t, e_t, x_t, w1p, w1e, b1, w2, b2, w3, b3)


# ----------------------------------------------------------------------------
# Full DeformNet forward
# ----------------------------------------------------------------------------
def deform_net_forward(x, e, params, tables, bb, *, tm=512):
    x_shape = x.shape
    scale = (bb[1] - bb[0]).reshape(3, 1)                  # (3, 1)
    shift = bb[0].reshape(3, 1)                            # (3, 1)

    x_t = x.reshape(-1, x.shape[-1]).T                     # (3, N) raw coords
    e_t = e.reshape(-1, e.shape[-1]).T                     # (D_E, N)
    n = x_t.shape[1]

    x_norm_t = (x_t - shift) / scale                       # normalize to [0, 1]
    table_flat = jnp.concatenate(tables, axis=0)           # (L*HASHMAP, F)
    pe_t = hash_encode_t(x_norm_t, table_flat)             # (D_PE, N)

    # Pad the point axis to a tile multiple (adaptive tile for small N).
    tm_eff = min(tm, _round_up(n, 128))
    n_pad = _round_up(n, tm_eff)
    if n_pad != n:
        pad = ((0, 0), (0, n_pad - n))
        pe_t = jnp.pad(pe_t, pad)
        e_t = jnp.pad(e_t, pad)
        x_t = jnp.pad(x_t, pad)

    # Fold bbox de-normalization into the last layer:
    #   (h@w3 + b3 + x_norm)*scale + shift == h@(w3*scale) + b3*scale + x_raw
    w1, b1, w2, b2, w3, b3 = params
    srow = scale.reshape(1, 3)
    folded = (
        w1[:D_PE].T,                                       # (WIDTH, D_PE)
        w1[D_PE:].T,                                       # (WIDTH, D_E)
        b1.reshape(WIDTH, 1),
        w2.T,                                              # (WIDTH, WIDTH)
        b2.reshape(WIDTH, 1),
        (w3 * srow).T,                                     # (3, WIDTH)
        (b3.reshape(1, 3) * srow).T,                       # (3, 1)
    )

    out_t = deform_mlp(pe_t, e_t, x_t, folded, tm=tm_eff)  # (3, n_pad)
    return out_t[:, :n].T.reshape(x_shape)


def deform_net_reference(x, e, params, tables, bb):
    """Pure-JAX reference (mirrors the PyTorch module forward)."""
    w1, b1, w2, b2, w3, b3 = params
    x_shape = x.shape
    scale = (bb[1] - bb[0]).reshape(1, 3)
    shift = bb[0].reshape(1, 3)
    x_flat = x.reshape(-1, x.shape[-1])
    x_norm = (x_flat - shift) / scale
    pe = hash_encode_ref(x_norm.T, tables).T               # (N, D_PE)
    inputs = jnp.concatenate([pe, e.reshape(-1, e.shape[-1])], axis=-1)
    h = jnp.tanh(inputs @ w1 + b1)
    h = jnp.tanh(h @ w2 + b2)
    o = h @ w3 + b3
    o = (o + x_norm) * scale + shift
    return o.reshape(x_shape)


# ----------------------------------------------------------------------------
# Deterministic parameter init (uniform(-1e-4, 1e-4), matching the module)
# ----------------------------------------------------------------------------
def init_params(key):
    ks = jax.random.split(key, 6 + N_LEVELS)
    u = lambda k, shape: jax.random.uniform(k, shape, jnp.float32, -1e-4, 1e-4)
    params = (
        u(ks[0], (D_IN, WIDTH)), u(ks[1], (1, WIDTH)),
        u(ks[2], (WIDTH, WIDTH)), u(ks[3], (1, WIDTH)),
        u(ks[4], (WIDTH, 3)), u(ks[5], (1, 3)),
    )
    tables = [u(ks[6 + l], (HASHMAP_SIZE, N_FEATURES_PER_LEVEL))
              for l in range(N_LEVELS)]
    return params, tables


if __name__ == "__main__":
    key = jax.random.PRNGKey(0)
    kx, ke, kp = jax.random.split(key, 3)

    bb = jnp.asarray(BOUNDING_BOX)
    params, tables = init_params(kp)

    fwd = jax.jit(deform_net_forward)

    # Main test: coordinates inside the bounding box, shape (batch, seq, 3)
    B, S = 2, 128
    x = jax.random.uniform(kx, (B, S, 3), jnp.float32, -1.0, 1.0)
    e = jax.random.normal(ke, (B, S, N_FEATURES_DEFORM), jnp.float32)

    out = jax.block_until_ready(fwd(x, e, params, tables, bb))
    ref = jax.block_until_ready(deform_net_reference(x, e, params, tables, bb))
    assert out.shape == x.shape
    np.testing.assert_allclose(np.asarray(out), np.asarray(ref),
                               rtol=1e-4, atol=1e-5)

    # Second test: point count not a multiple of the tile (exercises padding).
    B2, S2 = 2, 100
    x2 = jax.random.uniform(kx, (B2, S2, 3), jnp.float32, -1.0, 1.0)
    e2 = jax.random.normal(ke, (B2, S2, N_FEATURES_DEFORM), jnp.float32)
    out2 = jax.block_until_ready(fwd(x2, e2, params, tables, bb))
    ref2 = jax.block_until_ready(deform_net_reference(x2, e2, params, tables, bb))
    np.testing.assert_allclose(np.asarray(out2), np.asarray(ref2),
                               rtol=1e-4, atol=1e-5)

    print("KERNEL_OK")
</pallas_src>

<mosaic_0001>
module attributes {stable_mosaic.version = 11 : i64} {
  func.func @deform_mlp_kernel(%arg0: i32, %arg1: memref<6x256xf32, #tpu.memory_space<vmem>>, %arg2: memref<8x256xf32, #tpu.memory_space<vmem>>, %arg3: memref<3x256xf32, #tpu.memory_space<vmem>>, %arg4: memref<32x6xf32, #tpu.memory_space<vmem>>, %arg5: memref<32x8xf32, #tpu.memory_space<vmem>>, %arg6: memref<32x1xf32, #tpu.memory_space<vmem>>, %arg7: memref<32x32xf32, #tpu.memory_space<vmem>>, %arg8: memref<32x1xf32, #tpu.memory_space<vmem>>, %arg9: memref<3x32xf32, #tpu.memory_space<vmem>>, %arg10: memref<3x1xf32, #tpu.memory_space<vmem>>, %arg11: memref<3x256xf32, #tpu.memory_space<vmem>>) attributes {dimension_semantics = [#tpu.dimension_semantics<parallel>], iteration_bounds = array<i64: 1>, scalar_prefetch = 0 : i64, scratch_operands = 0 : i64, tpu.core_type = #tpu.core_type<tc>, window_params = [{transform_indices = @transform_0, window_bounds = array<i64: 6, 256>}, {transform_indices = @transform_1, window_bounds = array<i64: 8, 256>}, {transform_indices = @transform_2, window_bounds = array<i64: 3, 256>}, {pipeline_mode = #tpu.pipeline_mode<synchronous>, transform_indices = @transform_3, window_bounds = array<i64: 32, 6>}, {pipeline_mode = #tpu.pipeline_mode<synchronous>, transform_indices = @transform_4, window_bounds = array<i64: 32, 8>}, {pipeline_mode = #tpu.pipeline_mode<synchronous>, transform_indices = @transform_5, window_bounds = array<i64: 32, 1>}, {pipeline_mode = #tpu.pipeline_mode<synchronous>, transform_indices = @transform_6, window_bounds = array<i64: 32, 32>}, {pipeline_mode = #tpu.pipeline_mode<synchronous>, transform_indices = @transform_7, window_bounds = array<i64: 32, 1>}, {pipeline_mode = #tpu.pipeline_mode<synchronous>, transform_indices = @transform_8, window_bounds = array<i64: 3, 32>}, {pipeline_mode = #tpu.pipeline_mode<synchronous>, transform_indices = @transform_9, window_bounds = array<i64: 3, 1>}, {transform_indices = @transform_10, window_bounds = array<i64: 3, 256>}]} {
    %c0 = arith.constant 0 : index
    %c0_0 = arith.constant 0 : index
    %0 = vector.load %arg4[%c0, %c0_0] : memref<32x6xf32, #tpu.memory_space<vmem>>, vector<32x6xf32>
    %c0_1 = arith.constant 0 : index
    %c0_2 = arith.constant 0 : index
    %1 = vector.load %arg1[%c0_1, %c0_2] : memref<6x256xf32, #tpu.memory_space<vmem>>, vector<6x256xf32>
    %cst = arith.constant dense<0.000000e+00> : vector<32x256xf32>
    %2 = tpu.matmul %0, %1, %cst {dimension_numbers = #tpu.dot_dimension_numbers<[1], [0], [0], [1], [0, 0, 1, 1], [], []>} : vector<32x6xf32>, vector<6x256xf32>, vector<32x256xf32> -> vector<32x256xf32>
    %c0_3 = arith.constant 0 : index
    %c0_4 = arith.constant 0 : index
    %3 = vector.load %arg5[%c0_3, %c0_4] : memref<32x8xf32, #tpu.memory_space<vmem>>, vector<32x8xf32>
    %c0_5 = arith.constant 0 : index
    %c0_6 = arith.constant 0 : index
    %4 = vector.load %arg2[%c0_5, %c0_6] : memref<8x256xf32, #tpu.memory_space<vmem>>, vector<8x256xf32>
    %cst_7 = arith.constant dense<0.000000e+00> : vector<32x256xf32>
    %5 = tpu.matmul %3, %4, %cst_7 {dimension_numbers = #tpu.dot_dimension_numbers<[1], [0], [0], [1], [0, 0, 1, 1], [], []>} : vector<32x8xf32>, vector<8x256xf32>, vector<32x256xf32> -> vector<32x256xf32>
    %6 = arith.addf %2, %5 : vector<32x256xf32>
    %c0_8 = arith.constant 0 : index
    %c0_9 = arith.constant 0 : index
    %7 = vector.load %arg6[%c0_8, %c0_9] : memref<32x1xf32, #tpu.memory_space<vmem>>, vector<32x1xf32>
    %8 = vector.broadcast %7 : vector<32x1xf32> to vector<32x256xf32>
    %9 = arith.addf %6, %8 : vector<32x256xf32>
    %10 = math.tanh %9 : vector<32x256xf32>
    %c0_10 = arith.constant 0 : index
    %c0_11 = arith.constant 0 : index
    %11 = vector.load %arg7[%c0_10, %c0_11] : memref<32x32xf32, #tpu.memory_space<vmem>>, vector<32x32xf32>
    %cst_12 = arith.constant dense<0.000000e+00> : vector<32x256xf32>
    %12 = tpu.matmul %11, %10, %cst_12 {dimension_numbers = #tpu.dot_dimension_numbers<[1], [0], [0], [1], [0, 0, 1, 1], [], []>} : vector<32x32xf32>, vector<32x256xf32>, vector<32x256xf32> -> vector<32x256xf32>
    %c0_13 = arith.constant 0 : index
    %c0_14 = arith.constant 0 : index
    %13 = vector.load %arg8[%c0_13, %c0_14] : memref<32x1xf32, #tpu.memory_space<vmem>>, vector<32x1xf32>
    %14 = vector.broadcast %13 : vector<32x1xf32> to vector<32x256xf32>
    %15 = arith.addf %12, %14 : vector<32x256xf32>
    %16 = math.tanh %15 : vector<32x256xf32>
    %c0_15 = arith.constant 0 : index
    %c0_16 = arith.constant 0 : index
    %17 = vector.load %arg9[%c0_15, %c0_16] : memref<3x32xf32, #tpu.memory_space<vmem>>, vector<3x32xf32>
    %cst_17 = arith.constant dense<0.000000e+00> : vector<3x256xf32>
    %18 = tpu.matmul %17, %16, %cst_17 {dimension_numbers = #tpu.dot_dimension_numbers<[1], [0], [0], [1], [0, 0, 1, 1], [], []>} : vector<3x32xf32>, vector<32x256xf32>, vector<3x256xf32> -> vector<3x256xf32>
    %c0_18 = arith.constant 0 : index
    %c0_19 = arith.constant 0 : index
    %19 = vector.load %arg10[%c0_18, %c0_19] : memref<3x1xf32, #tpu.memory_space<vmem>>, vector<3x1xf32>
    %20 = vector.broadcast %19 : vector<3x1xf32> to vector<3x256xf32>
    %21 = arith.addf %18, %20 : vector<3x256xf32>
    %c0_20 = arith.constant 0 : index
    %c0_21 = arith.constant 0 : index
    %22 = vector.load %arg3[%c0_20, %c0_21] : memref<3x256xf32, #tpu.memory_space<vmem>>, vector<3x256xf32>
    %23 = arith.addf %21, %22 : vector<3x256xf32>
    %c0_22 = arith.constant 0 : index
    %c0_23 = arith.constant 0 : index
    %24 = vector.load %arg11[%c0_22, %c0_23] : memref<3x256xf32, #tpu.memory_space<vmem>>, vector<3x256xf32>
    tpu.vector_store %arg11[%c0_22, %c0_23], %23 {strides = array<i32>} : memref<3x256xf32, #tpu.memory_space<vmem>>, vector<3x256xf32>,
    return
  }
  func.func @transform_0(%arg0: i32) -> (i32, i32) {
    %c0_i32 = arith.constant 0 : i32
    %c0_i32_0 = arith.constant 0 : i32
    return %c0_i32, %arg0 : i32, i32
  }
  func.func @transform_1(%arg0: i32) -> (i32, i32) {
    %c0_i32 = arith.constant 0 : i32
    %c0_i32_0 = arith.constant 0 : i32
    return %c0_i32, %arg0 : i32, i32
  }
  func.func @transform_2(%arg0: i32) -> (i32, i32) {
    %c0_i32 = arith.constant 0 : i32
    %c0_i32_0 = arith.constant 0 : i32
    return %c0_i32, %arg0 : i32, i32
  }
  func.func @transform_3(%arg0: i32) -> (i32, i32) {
    %c0_i32 = arith.constant 0 : i32
    %c0_i32_0 = arith.constant 0 : i32
    %c0_i32_1 = arith.constant 0 : i32
    return %c0_i32, %c0_i32_0 : i32, i32
  }
  func.func @transform_4(%arg0: i32) -> (i32, i32) {
    %c0_i32 = arith.constant 0 : i32
    %c0_i32_0 = arith.constant 0 : i32
    %c0_i32_1 = arith.constant 0 : i32
    return %c0_i32, %c0_i32_0 : i32, i32
  }
  func.func @transform_5(%arg0: i32) -> (i32, i32) {
    %c0_i32 = arith.constant 0 : i32
    %c0_i32_0 = arith.constant 0 : i32
    %c0_i32_1 = arith.constant 0 : i32
    return %c0_i32, %c0_i32_0 : i32, i32
  }
  func.func @transform_6(%arg0: i32) -> (i32, i32) {
    %c0_i32 = arith.constant 0 : i32
    %c0_i32_0 = arith.constant 0 : i32
    %c0_i32_1 = arith.constant 0 : i32
    return %c0_i32, %c0_i32_0 : i32, i32
  }
  func.func @transform_7(%arg0: i32) -> (i32, i32) {
    %c0_i32 = arith.constant 0 : i32
    %c0_i32_0 = arith.constant 0 : i32
    %c0_i32_1 = arith.constant 0 : i32
    return %c0_i32, %c0_i32_0 : i32, i32
  }
  func.func @transform_8(%arg0: i32) -> (i32, i32) {
    %c0_i32 = arith.constant 0 : i32
    %c0_i32_0 = arith.constant 0 : i32
    %c0_i32_1 = arith.constant 0 : i32
    return %c0_i32, %c0_i32_0 : i32, i32
  }
  func.func @transform_9(%arg0: i32) -> (i32, i32) {
    %c0_i32 = arith.constant 0 : i32
    %c0_i32_0 = arith.constant 0 : i32
    %c0_i32_1 = arith.constant 0 : i32
    return %c0_i32, %c0_i32_0 : i32, i32
  }
  func.func @transform_10(%arg0: i32) -> (i32, i32) {
    %c0_i32 = arith.constant 0 : i32
    %c0_i32_0 = arith.constant 0 : i32
    return %c0_i32, %arg0 : i32, i32
  }
}

</mosaic_0001>

<bundles_post_ra>
// kernel: deform_net_forward.1
= control target key start
LH: loop header
LB: loop body
LE: loop exit
PB: predicated region body
PF: predicated region fallthrough
CT: control target
= control target key end

     0   :  { %v608_v2 = vmov 0.0   ;;  %vm47_vm0 = vcmask 64512   ;;  %vm162_vm1 = vcmask 1045504   ;;  %v609_v6 = vmov 0   ;;  %s771_s1 = inlined_call_operand.vmem [shape: f32[8,256], index: 1, kind: input, shape index: {}]   ;;  %s772_s4 = inlined_call_operand.vmem [shape: f32[32,8], index: 4, kind: input, shape index: {}]   ;;  %s773_s0 = inlined_call_operand.vmem [shape: f32[6,256], index: 0, kind: input, shape index: {}]   ;;  %s774_s5 = inlined_call_operand.vmem [shape: f32[32,1], index: 5, kind: input, shape index: {}]   ;;  %s775_s7 = inlined_call_operand.vmem [shape: f32[32,1], index: 7, kind: input, shape index: {}]   ;;  %s776_s3 = inlined_call_operand.vmem [shape: f32[32,6], index: 3, kind: input, shape index: {}]   ;;  %s777_s9 = inlined_call_operand.vmem [shape: f32[3,1], index: 9, kind: input, shape index: {}]   ;;  %s778_s6 = inlined_call_operand.vmem [shape: f32[32,32], index: 6, kind: input, shape index: {}]   ;;  %s779_s8 = inlined_call_operand.vmem [shape: f32[3,32], index: 8, kind: input, shape index: {}]   ;;  %s780_s2 = inlined_call_operand.vmem [shape: f32[3,256], index: 2, kind: input, shape index: {}]   ;;  %s781_s10 = inlined_call_operand.vmem [shape: f32[3,256], index: 10, kind: output, shape index: {}]  }
   0x1   :  { %v46_v0 = vld [vmem:[%s771_s1 + $0x8] sm:$0xff]  ;;  %v45_v1 = vld [vmem:[%s771_s1] sm:$0xff]  ;;  %124 = vmatprep.mubr.f32.mxu0 %v608_v2  ;;  %403 = vmatprep.mubr.f32.mxu1 %v608_v2  ;;  %v260_v9 = vld [vmem:[%s774_s5 + $0x10] sm:$0xff]  ;;  %vm149_vm2 = vcmask 48128   ;;  %vm326_vm3 = vcmask 261120  }
   0x2   :  { %v41_v3 = vld [vmem:[%s772_s4] sm:$0xff]  ;;  %60 = vmatprep.subr.mxu0 %v46_v0  ;;  %v40_v5 = vld [vmem:[%s773_s0 + $0x8] sm:$0x3f]  ;;  %573 = vset.pattern.permute.xlu0 %v609_v6  ;;  %v261_v11 = vld [vmem:[%s774_s5 + $0x18] sm:$0xff] }
   0x3   :  { %v39_v4 = vld [vmem:[%s773_s0] sm:$0x3f]  ;;  %61 = vmatpush1.msra.mxu0 %v45_v1  ;;  %574 = vset.pattern.permute.xlu1 %v609_v6  ;;  %v42_v7 = vld [vmem:[%s772_s4 + $0x8] sm:$0xff]  ;;  %v43_v12 = vld [vmem:[%s772_s4 + $0x10] sm:$0xff] }
   0x4   :  { %532 = vmatmul.mubr.msk.f32.vlgmr.msra.gmra.mrb[0].mxu0 %vm47_vm0, %v41_v3  ;;  %536 = vmatprep.subr.msk.mxu0 %vm162_vm1, %v40_v5  ;;  %v258_v8 = vld [vmem:[%s774_s5] sm:$0xff]  ;;  %v259_v10 = vld [vmem:[%s774_s5 + $0x8] sm:$0xff]  ;;  %v44_v15 = vld [vmem:[%s772_s4 + $0x18] sm:$0xff] }
   0x5   :  { %130 = vmatprep.mubr.f32.mxu0 %v608_v2  ;;  %537 = vmatpush1.msk.msra.mxu0 %vm162_vm1, %v39_v4  ;;  %v302_v13 = vld [vmem:[%s775_s7] sm:$0xff]  ;;  %v303_v14 = vld [vmem:[%s775_s7 + $0x8] sm:$0xff]  ;;  %v304_v16 = vld [vmem:[%s775_s7 + $0x10] sm:$0xff] }
   0x6   :  { %264 = vperm.xlu0 %573, %v258_v8   ;;  %274 = vperm.xlu1 %574, %v260_v9   ;;  %v305_v17 = vld [vmem:[%s775_s7 + $0x18] sm:$0xff]  ;;  %v35_v18 = vld [vmem:[%s776_s3] sm:$0xff]  ;;  %v36_v20 = vld [vmem:[%s776_s3 + $0x8] sm:$0xff] }
   0x7   :  { %v437_v19 = vld [vmem:[%s777_s9] sm:$0x7]  ;;  %v37_v21 = vld [vmem:[%s776_s3 + $0x10] sm:$0xff]  ;;  %v38_v22 = vld [vmem:[%s776_s3 + $0x18] sm:$0xff] }
   0x8   :  { %533 = vmatmul.mubr.msk.f32.gmra.mrb[2].mxu0 %vm47_vm0, %v42_v7  ;;  %v298_v55 = vld [vmem:[%s778_s6] sm:$0xff]  ;;  %v299_v56 = vld [vmem:[%s778_s6 + $0x8] sm:$0xff]  ;;  %v300_v57 = vld [vmem:[%s778_s6 + $0x10] sm:$0xff] }
   0x9   :  { %136 = vmatprep.mubr.f32.mxu0 %v608_v2  ;;  %v301_v58 = vld [vmem:[%s778_s6 + $0x18] sm:$0xff] }
   0xa   :  { %269 = vperm.xlu0 %573, %v259_v10   ;;  %279 = vperm.xlu1 %574, %v261_v11  }
   0xc   :  { %534 = vmatmul.mubr.msk.f32.gmra.mrb[4].mxu0 %vm47_vm0, %v43_v12 }
   0xd   :  { %142 = vmatprep.mubr.f32.mxu0 %v608_v2 }
   0xe   :  { %308 = vperm.xlu0 %573, %v302_v13   ;;  %313 = vperm.xlu1 %574, %v303_v14  }
  0x10   :  { %535 = vmatmul.mubr.msk.f32.gmra.mrb[6].mxu0 %vm47_vm0, %v44_v15 }
  0x11   :  { %233 = vmatprep.mubr.f32.mxu0 %v608_v2 }
  0x12   :  { %318 = vperm.xlu0 %573, %v304_v16   ;;  %323 = vperm.xlu1 %574, %v305_v17  }
  0x14   :  { %538 = vmatmul.mubr.msk.f32.vlgmr.msra.gmra.mrb[0].mxu0 %vm149_vm2, %v35_v18 }
  0x15   :  { %239 = vmatprep.mubr.f32.mxu0 %v608_v2 }
  0x16   :  { %440 = vperm.xlu0 %573, %v437_v19  }
  0x18   :  { %539 = vmatmul.mubr.msk.f32.gmra.mrb[2].mxu0 %vm149_vm2, %v36_v20 }
  0x19   :  { %245 = vmatprep.mubr.f32.mxu0 %v608_v2 }
  0x1c   :  { %540 = vmatmul.mubr.msk.f32.gmra.mrb[4].mxu0 %vm149_vm2, %v37_v21 }
  0x1d   :  { %251 = vmatprep.mubr.f32.mxu0 %v608_v2 }
  0x20   :  { %541 = vmatmul.mubr.msk.f32.gmra.mrb[6].mxu0 %vm149_vm2, %v38_v22 }
  0x85   :  { %v265_v23 = vpop.permute.xlu0 %264  ;;  %v275_v32 = vpop.permute.xlu1 %274 }
  0x89   :  { %v270_v28 = vpop.permute.xlu0 %269  ;;  %v280_v38 = vpop.permute.xlu1 %279 }
  0x8d   :  { %v309_v59 = vpop.permute.xlu0 %308  ;;  %v314_v0 = vpop.permute.xlu1 %313 }
  0x91   :  { %v319_v6 = vpop.permute.xlu0 %318 }
  0xe7   :  { %v235_v24 = vpop.f32.mrb[0].mxu0 }
  0xe8   :  { %v282_v25 = vadd.f32 %v265_v23, %v235_v24  ;;  %v237_v26 = vpop.f32.mrb[1].mxu0 }
  0xe9   :  { %v283_v27 = vadd.f32 %v265_v23, %v237_v26 }
  0xea   :  { %576 = vtanh.f32 %v282_v25 }
  0xeb   :  { %v241_v29 = vpop.f32.mrb[2].mxu0  ;;  %578 = vtanh.f32 %v283_v27  ;;  %v436_v27 = vld [vmem:[%s779_s8] sm:$0x7] }
  0xec   :  { %v284_v30 = vadd.f32 %v270_v28, %v241_v29  ;;  %v243_v31 = vpop.f32.mrb[3].mxu0  ;;  %v441_v29 = vpop.permute.xlu0 %440 }
  0xed   :  { %v285_v33 = vadd.f32 %v270_v28, %v243_v31  ;;  %v517_v28 = vld [vmem:[%s780_s2] sm:$0x77] }
  0xee   :  { %580 = vtanh.f32 %v284_v30  ;;  %v519_v31 = vcombine.high %v517_v28, %v517_v28 }
  0xef   :  { %582 = vtanh.f32 %v285_v33  ;;  %v247_v34 = vpop.f32.mrb[4].mxu0 }
  0xf0   :  { %v286_v35 = vadd.f32 %v275_v32, %v247_v34  ;;  %v249_v36 = vpop.f32.mrb[5].mxu0 }
  0xf1   :  { %v287_v37 = vadd.f32 %v275_v32, %v249_v36 }
  0xf2   :  { %584 = vtanh.f32 %v286_v35 }
  0xf3   :  { %v253_v39 = vpop.f32.mrb[6].mxu0  ;;  %586 = vtanh.f32 %v287_v37 }
  0xf4   :  { %v288_v40 = vadd.f32 %v280_v38, %v253_v39  ;;  %v255_v41 = vpop.f32.mrb[7].mxu0  ;;  %v577_v43 = vpop.eup %576 }
  0xf5   :  { %v289_v42 = vadd.f32 %v280_v38, %v255_v41  ;;  %v579_v44 = vpop.eup %578 }
  0xf6   :  { %588 = vtanh.f32 %v288_v40 }
  0xf7   :  { %590 = vtanh.f32 %v289_v42 }
  0xf8   :  { %v581_v45 = vpop.eup %580 }
  0xf9   :  { %v583_v46 = vpop.eup %582  ;;  %v549_v47 = vpack.c.bf16 %v581_v45, %v577_v43 }
  0xfa   :  { %v547_v48 = vpack.c.bf16 %v583_v46, %v579_v44 }
  0xfc   :  { %548 = vmatprep.subr.bf16.mxu1 %v547_v48  ;;  %v585_v49 = vpop.eup %584 }
  0xfd   :  { %550 = vmatpush1.bf16.msra.mxu1 %v549_v47  ;;  %v587_v50 = vpop.eup %586 }
 0x100   :  { %v589_v51 = vpop.eup %588 }
 0x101   :  { %v591_v52 = vpop.eup %590  ;;  %v553_v53 = vpack.c.bf16 %v589_v51, %v585_v49 }
 0x102   :  { %v551_v54 = vpack.c.bf16 %v591_v52, %v587_v50 }
 0x104   :  { %552 = vmatprep.subr.bf16.mxu1 %v551_v54 }
 0x105   :  { %554 = vmatpush1.bf16.msra.mxu1 %v553_v53 }
 0x108   :  { %542 = vmatmul.mubr.msk.f32.vlgmr.msra.gmra.mrb[0].mxu1 %vm326_vm3, %v298_v55 }
 0x109   :  { %409 = vmatprep.mubr.f32.mxu1 %v608_v2 }
 0x10c   :  { %543 = vmatmul.mubr.msk.f32.gmra.mrb[2].mxu1 %vm326_vm3, %v299_v56 }
 0x10d   :  { %415 = vmatprep.mubr.f32.mxu1 %v608_v2 }
 0x110   :  { %544 = vmatmul.mubr.msk.f32.gmra.mrb[4].mxu1 %vm326_vm3, %v300_v57 }
 0x111   :  { %421 = vmatprep.mubr.f32.mxu1 %v608_v2 }
 0x114   :  { %545 = vmatmul.mubr.msk.f32.gmra.mrb[6].mxu1 %vm326_vm3, %v301_v58 }
 0x115   :  { %510 = vmatprep.mubr.f32.mxu1 %v608_v2  ;;  %v324_v2 = vpop.permute.xlu1 %323 }
 0x1db   :  { %v405_v60 = vpop.f32.mrb[0].mxu1 }
 0x1dc   :  { %v406_v61 = vadd.f32 %v405_v60, %v309_v59  ;;  %v407_v62 = vpop.f32.mrb[1].mxu1 }
 0x1dd   :  { %v408_v63 = vadd.f32 %v407_v62, %v309_v59 }
 0x1de   :  { %592 = vtanh.f32 %v406_v61 }
 0x1df   :  { %v411_v1 = vpop.f32.mrb[2].mxu1  ;;  %594 = vtanh.f32 %v408_v63 }
 0x1e0   :  { %v412_v3 = vadd.f32 %v411_v1, %v314_v0  ;;  %v413_v4 = vpop.f32.mrb[3].mxu1 }
 0x1e1   :  { %v414_v5 = vadd.f32 %v413_v4, %v314_v0 }
 0x1e2   :  { %596 = vtanh.f32 %v412_v3 }
 0x1e3   :  { %598 = vtanh.f32 %v414_v5  ;;  %v417_v7 = vpop.f32.mrb[4].mxu1 }
 0x1e4   :  { %v418_v8 = vadd.f32 %v417_v7, %v319_v6  ;;  %v419_v9 = vpop.f32.mrb[5].mxu1 }
 0x1e5   :  { %v420_v10 = vadd.f32 %v419_v9, %v319_v6 }
 0x1e6   :  { %600 = vtanh.f32 %v418_v8 }
 0x1e7   :  { %v423_v11 = vpop.f32.mrb[6].mxu1  ;;  %602 = vtanh.f32 %v420_v10 }
 0x1e8   :  { %v424_v12 = vadd.f32 %v423_v11, %v324_v2  ;;  %v425_v13 = vpop.f32.mrb[7].mxu1  ;;  %v593_v15 = vpop.eup %592 }
 0x1e9   :  { %v426_v14 = vadd.f32 %v425_v13, %v324_v2  ;;  %v595_v16 = vpop.eup %594 }
 0x1ea   :  { %604 = vtanh.f32 %v424_v12 }
 0x1eb   :  { %606 = vtanh.f32 %v426_v14 }
 0x1ec   :  { %v597_v17 = vpop.eup %596 }
 0x1ed   :  { %v599_v18 = vpop.eup %598  ;;  %v557_v19 = vpack.c.bf16 %v597_v17, %v593_v15 }
 0x1ee   :  { %v555_v20 = vpack.c.bf16 %v599_v18, %v595_v16 }
 0x1f0   :  { %556 = vmatprep.subr.bf16.mxu1 %v555_v20  ;;  %v601_v21 = vpop.eup %600 }
 0x1f1   :  { %558 = vmatpush1.bf16.msra.mxu1 %v557_v19  ;;  %v603_v22 = vpop.eup %602 }
 0x1f4   :  { %v605_v23 = vpop.eup %604 }
 0x1f5   :  { %v607_v24 = vpop.eup %606  ;;  %v561_v25 = vpack.c.bf16 %v605_v23, %v601_v21 }
 0x1f6   :  { %v559_v26 = vpack.c.bf16 %v607_v24, %v603_v22 }
 0x1f8   :  { %560 = vmatprep.subr.bf16.mxu1 %v559_v26 }
 0x1f9   :  { %562 = vmatpush1.bf16.msra.mxu1 %v561_v25 }
 0x1fc   :  { %546 = vmatmul.mubr.msk.f32.vlgmr.msra.gmra.mrb[8].mxu1 %vm326_vm3, %v436_v27 }
 0x2cf   :  { %v512_v30 = vpop.f32.mrb[8].mxu1 }
 0x2d0   :  { %v513_v32 = vadd.f32 %v512_v30, %v441_v29  ;;  %v514_v33 = vpop.f32.mrb[9].mxu1 }
 0x2d1   :  { %v515_v34 = vadd.f32 %v514_v33, %v441_v29 }
 0x2d2   :  { %v521_v35 = vadd.f32 %v517_v28, %v513_v32 }
 0x2d3   :  { %v522_v36 = vadd.f32 %v519_v31, %v515_v34 }
 0x2d5   :  { %v525_v37 = vcombine.low %v521_v35, %v522_v36 }
 0x2d7   :  { %527 = vst [vmem:[%s781_s10] sm:$0x77] %v525_v37 }

</bundles_post_ra>
